<compile_context>
chip_gen: v7x
topology: tpu7x:2x2x1
jax: 0.10.0
libtpu: 0.0.40
codegen_flags: <defaults>
</compile_context>

<pallas_src>
import functools

import jax
import jax.numpy as jnp
from jax.experimental import pallas as pl
from jax.experimental.pallas import tpu as pltpu

_BN_EPS = 1e-5


def _lane_channel_fold(v, C, W):
    """Fold per-lane sums (lane l = wi*C + ci) so every lane holds its
    channel's total over all wi.  XLU rolls; log2(W) steps when W is 2^k."""
    WC = C * W
    if W & (W - 1) == 0:                       # power-of-two: log fold
        t = v
        s = C
        while s < WC:
            t = t + pltpu.roll(t, shift=s, axis=1)
            s *= 2
        return t
    t = v                                      # generic: linear fold
    for j in range(1, W):
        t = t + pltpu.roll(v, shift=j * C, axis=1)
    return t


def hrfe_kernel(x_ref, m_ref, ga_ref, bt_ref, out_ref, xpad_ref, *, C):
    """One grid step = one HRFE block.

    x_ref   : (N, H, W*C)        lane-dense input (consumed only at block 0)
    m_ref   : (1, 3, W*C, W*C)   banded conv matrices for this block (dy=0..2)
    ga_ref  : (1, 1, W*C)        gamma, lane-replicated per channel
    bt_ref  : (1, 1, W*C)        beta,  lane-replicated per channel
    out_ref : (N, H, W*C)        written only at the last block
    xpad_ref: (N, H+2, W*C)      VMEM-resident activation with zero H-halo
    """
    N, H, WC = out_ref.shape
    W = WC // C
    i = pl.program_id(0)
    last = pl.num_programs(0) - 1

    # Block 0: zero the H-padded activation buffer once and copy the input
    # into its interior.  (W zero-padding is folded into the band matrices.)
    @pl.when(i == 0)
    def _():
        xpad_ref[...] = jnp.zeros_like(xpad_ref)
        xpad_ref[:, 1:H + 1, :] = x_ref[...]

    # 3x3 conv: per image, 3 row-shifted banded matmuls (K = N = W*C).
    # Accumulate BN per-lane sums on the fly; everything stays in vregs.
    accs = []
    s1 = jnp.zeros((1, WC), jnp.float32)
    s2 = jnp.zeros((1, WC), jnp.float32)
    for n in range(N):
        a = jnp.dot(xpad_ref[n, 0:H, :], m_ref[0, 0],
                    preferred_element_type=jnp.float32)
        for dy in range(1, 3):
            a = a + jnp.dot(xpad_ref[n, dy:dy + H, :], m_ref[0, dy],
                            preferred_element_type=jnp.float32)
        accs.append(a)
        s1 = s1 + jnp.sum(a, axis=0, keepdims=True)
        s2 = s2 + jnp.sum(a * a, axis=0, keepdims=True)

    # BatchNorm2d training-mode (biased) batch stats; conv bias dropped since
    # it is exactly cancelled by the mean subtraction.
    t1 = _lane_channel_fold(s1, C, W)          # per-channel, lane-replicated
    t2 = _lane_channel_fold(s2, C, W)
    inv_cnt = 1.0 / float(N * H * W)
    mean_l = t1 * inv_cnt
    var_l = t2 * inv_cnt - mean_l * mean_l
    scale_l = ga_ref[0] * jax.lax.rsqrt(var_l + _BN_EPS)
    shift_l = bt_ref[0] - mean_l * scale_l

    # normalize + affine + ReLU: one lane-dense FMA + max pass per image.
    ys = [jnp.maximum(a * scale_l + shift_l, 0.0) for a in accs]

    # Keep activation VMEM-resident for the next block (halo rows stay zero).
    @pl.when(i < last)
    def _():
        for n in range(N):
            xpad_ref[n, 1:H + 1, :] = ys[n]

    @pl.when(i == last)
    def _():
        for n in range(N):
            out_ref[n] = ys[n]


def _build_block_params(params, C, W):
    """Host-side glue: banded conv matrices + lane-replicated BN affines."""
    WC = W * C
    pos = jnp.arange(W)
    dx = pos[:, None] - pos[None, :] + 1        # dx[wi, wo] = wi - wo + 1
    valid = (dx >= 0) & (dx <= 2)
    dx_c = jnp.clip(dx, 0, 2)

    bands, gammas_l, betas_l = [], [], []
    for w_oihw, _bias, gamma, beta in params:
        # _bias is mathematically cancelled by train-mode BN mean subtraction.
        k = jnp.transpose(w_oihw.astype(jnp.float32), (2, 3, 1, 0))  # (kh,kw,ci,co)
        band = k[:, dx_c]                        # (kh, wi, wo, ci, co)
        band = jnp.where(valid[None, :, :, None, None], band, 0.0)
        band = jnp.transpose(band, (0, 1, 3, 2, 4)).reshape(3, WC, WC)
        bands.append(band)
        gammas_l.append(jnp.tile(gamma.astype(jnp.float32), W).reshape(1, WC))
        betas_l.append(jnp.tile(beta.astype(jnp.float32), W).reshape(1, WC))
    return jnp.stack(bands), jnp.stack(gammas_l), jnp.stack(betas_l)


@jax.jit
def hrfe_forward(x_nchw, params):
    """params: list of (w_oihw [C,C,3,3], bias [C], gamma [C], beta [C])."""
    N, C, H, W = x_nchw.shape
    WC = W * C
    num_blocks = len(params)

    x = jnp.transpose(x_nchw, (0, 2, 3, 1)).astype(jnp.float32).reshape(N, H, WC)
    bands, gammas_l, betas_l = _build_block_params(params, C, W)

    kernel = functools.partial(hrfe_kernel, C=C)
    y = pl.pallas_call(
        kernel,
        out_shape=jax.ShapeDtypeStruct((N, H, WC), jnp.float32),
        grid_spec=pltpu.PrefetchScalarGridSpec(
            num_scalar_prefetch=0,
            grid=(num_blocks,),
            in_specs=[
                pl.BlockSpec((N, H, WC), lambda i: (0, 0, 0)),         # x (block 0)
                pl.BlockSpec((1, 3, WC, WC), lambda i: (i, 0, 0, 0)),  # band weights
                pl.BlockSpec((1, 1, WC), lambda i: (i, 0, 0)),         # gamma (lane)
                pl.BlockSpec((1, 1, WC), lambda i: (i, 0, 0)),         # beta  (lane)
            ],
            out_specs=pl.BlockSpec((N, H, WC), lambda i: (0, 0, 0)),
            scratch_shapes=[
                pltpu.VMEM((N, H + 2, WC), jnp.float32),   # padded activation
            ],
        ),
        compiler_params=pltpu.CompilerParams(
            dimension_semantics=("arbitrary",)),
    )(x, bands, gammas_l, betas_l)

    return jnp.transpose(y.reshape(N, H, W, C), (0, 3, 1, 2))


def hrfe_reference(x_nchw, params):
    """Pure-JAX reference matching the PyTorch forward (training-mode BN)."""
    x = jnp.transpose(x_nchw, (0, 2, 3, 1)).astype(jnp.float32)
    for w_oihw, b, gamma, beta in params:
        w_hwio = jnp.transpose(w_oihw, (2, 3, 1, 0))
        y = jax.lax.conv_general_dilated(
            x, w_hwio, window_strides=(1, 1), padding='SAME',
            dimension_numbers=('NHWC', 'HWIO', 'NHWC')) + b
        mean = jnp.mean(y, axis=(0, 1, 2), keepdims=True)
        var = jnp.mean((y - mean) ** 2, axis=(0, 1, 2), keepdims=True)
        y = (y - mean) * jax.lax.rsqrt(var + _BN_EPS) * gamma + beta
        x = jnp.maximum(y, 0.0)
    return jnp.transpose(x, (0, 3, 1, 2))


if __name__ == "__main__":
    # HRFE(in_channels=8, num_blocks=2); W*C = 16*8 = 128 -> lane-dense rows.
    N, C, H, W = 2, 8, 16, 16
    num_blocks = 2

    key = jax.random.PRNGKey(0)
    keys = jax.random.split(key, 1 + 4 * num_blocks)
    x_nchw = jax.random.normal(keys[0], (N, C, H, W), jnp.float32)

    params = []
    for i in range(num_blocks):
        kw_, kb_, kg_, kbt_ = keys[1 + 4 * i: 1 + 4 * i + 4]
        w_oihw = 0.1 * jax.random.normal(kw_, (C, C, 3, 3), jnp.float32)
        bias = 0.1 * jax.random.normal(kb_, (C,), jnp.float32)
        gamma = 1.0 + 0.1 * jax.random.normal(kg_, (C,), jnp.float32)
        beta = 0.1 * jax.random.normal(kbt_, (C,), jnp.float32)
        params.append((w_oihw, bias, gamma, beta))

    out = jax.block_until_ready(hrfe_forward(x_nchw, params))
    ref = hrfe_reference(x_nchw, params)
    assert out.shape == x_nchw.shape, (out.shape, x_nchw.shape)
    max_err = float(jnp.max(jnp.abs(out - ref)))
    if max_err > 2e-3:
        raise AssertionError(f"kernel vs reference mismatch: {max_err}")

    print("KERNEL_OK")
</pallas_src>

<mosaic_0001>
module attributes {stable_mosaic.version = 11 : i64} {
  func.func @hrfe_kernel(%arg0: i32, %arg1: memref<2x16x128xf32, #tpu.memory_space<vmem>>, %arg2: memref<1x3x128x128xf32, #tpu.memory_space<vmem>>, %arg3: memref<1x1x128xf32, #tpu.memory_space<vmem>>, %arg4: memref<1x1x128xf32, #tpu.memory_space<vmem>>, %arg5: memref<2x16x128xf32, #tpu.memory_space<vmem>>, %arg6: memref<2x18x128xf32, #tpu.memory_space<vmem>>) attributes {dimension_semantics = [#tpu.dimension_semantics<arbitrary>], iteration_bounds = array<i64: 2>, scalar_prefetch = 0 : i64, scratch_operands = 1 : i64, tpu.core_type = #tpu.core_type<tc>, window_params = [{pipeline_mode = #tpu.pipeline_mode<synchronous>, transform_indices = @transform_0, window_bounds = array<i64: 2, 16, 128>}, {transform_indices = @transform_1, window_bounds = array<i64: 1, 3, 128, 128>}, {transform_indices = @transform_2, window_bounds = array<i64: 1, 1, 128>}, {transform_indices = @transform_3, window_bounds = array<i64: 1, 1, 128>}, {pipeline_mode = #tpu.pipeline_mode<synchronous>, transform_indices = @transform_4, window_bounds = array<i64: 2, 16, 128>}]} {
    %c0_i32 = arith.constant 0 : i32
    %0 = arith.cmpi eq, %arg0, %c0_i32 : i32
    %1 = arith.extui %0 : i1 to i32
    %c0_i32_0 = arith.constant 0 : i32
    %2 = arith.cmpi ne, %1, %c0_i32_0 : i32
    scf.if %2 {
      %cst_69 = arith.constant 0.000000e+00 : f32
      %103 = vector.broadcast %cst_69 : f32 to vector<2x18x128xf32>
      %c0_70 = arith.constant 0 : index
      %c0_71 = arith.constant 0 : index
      %c0_72 = arith.constant 0 : index
      %104 = vector.load %arg6[%c0_70, %c0_71, %c0_72] : memref<2x18x128xf32, #tpu.memory_space<vmem>>, vector<2x18x128xf32>
      tpu.vector_store %arg6[%c0_70, %c0_71, %c0_72], %103 {strides = array<i32>} : memref<2x18x128xf32, #tpu.memory_space<vmem>>, vector<2x18x128xf32>,
      %c0_73 = arith.constant 0 : index
      %c0_74 = arith.constant 0 : index
      %c0_75 = arith.constant 0 : index
      %105 = vector.load %arg1[%c0_73, %c0_74, %c0_75] : memref<2x16x128xf32, #tpu.memory_space<vmem>>, vector<2x16x128xf32>
      %c0_76 = arith.constant 0 : index
      %c1_77 = arith.constant 1 : index
      %c0_78 = arith.constant 0 : index
      %106 = vector.load %arg6[%c0_76, %c1_77, %c0_78] : memref<2x18x128xf32, #tpu.memory_space<vmem>>, vector<2x16x128xf32>
      tpu.vector_store %arg6[%c0_76, %c1_77, %c0_78], %105 {strides = array<i32>} : memref<2x18x128xf32, #tpu.memory_space<vmem>>, vector<2x16x128xf32>,
    } else {
    }
    %cst = arith.constant 0.000000e+00 : f32
    %3 = vector.broadcast %cst : f32 to vector<1x128xf32>
    %cst_1 = arith.constant 0.000000e+00 : f32
    %4 = vector.broadcast %cst_1 : f32 to vector<1x128xf32>
    %c0 = arith.constant 0 : index
    %c0_2 = arith.constant 0 : index
    %c0_3 = arith.constant 0 : index
    %5 = vector.load %arg6[%c0, %c0_2, %c0_3] : memref<2x18x128xf32, #tpu.memory_space<vmem>>, vector<1x16x128xf32>
    %6 = vector.shape_cast %5 : vector<1x16x128xf32> to vector<16x128xf32>
    %c0_4 = arith.constant 0 : index
    %c0_5 = arith.constant 0 : index
    %c0_6 = arith.constant 0 : index
    %c0_7 = arith.constant 0 : index
    %7 = vector.load %arg2[%c0_4, %c0_5, %c0_6, %c0_7] : memref<1x3x128x128xf32, #tpu.memory_space<vmem>>, vector<1x1x128x128xf32>
    %8 = vector.shape_cast %7 : vector<1x1x128x128xf32> to vector<128x128xf32>
    %cst_8 = arith.constant dense<0.000000e+00> : vector<16x128xf32>
    %9 = tpu.matmul %6, %8, %cst_8 {dimension_numbers = #tpu.dot_dimension_numbers<[1], [0], [0], [1], [0, 0, 1, 1], [], []>} : vector<16x128xf32>, vector<128x128xf32>, vector<16x128xf32> -> vector<16x128xf32>
    %c0_9 = arith.constant 0 : index
    %c1 = arith.constant 1 : index
    %c0_10 = arith.constant 0 : index
    %10 = vector.load %arg6[%c0_9, %c1, %c0_10] : memref<2x18x128xf32, #tpu.memory_space<vmem>>, vector<1x16x128xf32>
    %11 = vector.shape_cast %10 : vector<1x16x128xf32> to vector<16x128xf32>
    %c0_11 = arith.constant 0 : index
    %c1_12 = arith.constant 1 : index
    %c0_13 = arith.constant 0 : index
    %c0_14 = arith.constant 0 : index
    %12 = vector.load %arg2[%c0_11, %c1_12, %c0_13, %c0_14] : memref<1x3x128x128xf32, #tpu.memory_space<vmem>>, vector<1x1x128x128xf32>
    %13 = vector.shape_cast %12 : vector<1x1x128x128xf32> to vector<128x128xf32>
    %cst_15 = arith.constant dense<0.000000e+00> : vector<16x128xf32>
    %14 = tpu.matmul %11, %13, %cst_15 {dimension_numbers = #tpu.dot_dimension_numbers<[1], [0], [0], [1], [0, 0, 1, 1], [], []>} : vector<16x128xf32>, vector<128x128xf32>, vector<16x128xf32> -> vector<16x128xf32>
    %15 = arith.addf %9, %14 : vector<16x128xf32>
    %c0_16 = arith.constant 0 : index
    %c2 = arith.constant 2 : index
    %c0_17 = arith.constant 0 : index
    %16 = vector.load %arg6[%c0_16, %c2, %c0_17] : memref<2x18x128xf32, #tpu.memory_space<vmem>>, vector<1x16x128xf32>
    %17 = vector.shape_cast %16 : vector<1x16x128xf32> to vector<16x128xf32>
    %c0_18 = arith.constant 0 : index
    %c2_19 = arith.constant 2 : index
    %c0_20 = arith.constant 0 : index
    %c0_21 = arith.constant 0 : index
    %18 = vector.load %arg2[%c0_18, %c2_19, %c0_20, %c0_21] : memref<1x3x128x128xf32, #tpu.memory_space<vmem>>, vector<1x1x128x128xf32>
    %19 = vector.shape_cast %18 : vector<1x1x128x128xf32> to vector<128x128xf32>
    %cst_22 = arith.constant dense<0.000000e+00> : vector<16x128xf32>
    %20 = tpu.matmul %17, %19, %cst_22 {dimension_numbers = #tpu.dot_dimension_numbers<[1], [0], [0], [1], [0, 0, 1, 1], [], []>} : vector<16x128xf32>, vector<128x128xf32>, vector<16x128xf32> -> vector<16x128xf32>
    %21 = arith.addf %15, %20 : vector<16x128xf32>
    %cst_23 = arith.constant dense<0.000000e+00> : vector<128xf32>
    %22 = vector.multi_reduction <add>, %21, %cst_23 [0] : vector<16x128xf32> to vector<128xf32>
    %23 = vector.shape_cast %22 : vector<128xf32> to vector<1x128xf32>
    %24 = arith.addf %3, %23 : vector<1x128xf32>
    %25 = arith.mulf %21, %21 : vector<16x128xf32>
    %cst_24 = arith.constant dense<0.000000e+00> : vector<128xf32>
    %26 = vector.multi_reduction <add>, %25, %cst_24 [0] : vector<16x128xf32> to vector<128xf32>
    %27 = vector.shape_cast %26 : vector<128xf32> to vector<1x128xf32>
    %28 = arith.addf %4, %27 : vector<1x128xf32>
    %c1_25 = arith.constant 1 : index
    %c0_26 = arith.constant 0 : index
    %c0_27 = arith.constant 0 : index
    %29 = vector.load %arg6[%c1_25, %c0_26, %c0_27] : memref<2x18x128xf32, #tpu.memory_space<vmem>>, vector<1x16x128xf32>
    %30 = vector.shape_cast %29 : vector<1x16x128xf32> to vector<16x128xf32>
    %c0_28 = arith.constant 0 : index
    %c0_29 = arith.constant 0 : index
    %c0_30 = arith.constant 0 : index
    %c0_31 = arith.constant 0 : index
    %31 = vector.load %arg2[%c0_28, %c0_29, %c0_30, %c0_31] : memref<1x3x128x128xf32, #tpu.memory_space<vmem>>, vector<1x1x128x128xf32>
    %32 = vector.shape_cast %31 : vector<1x1x128x128xf32> to vector<128x128xf32>
    %cst_32 = arith.constant dense<0.000000e+00> : vector<16x128xf32>
    %33 = tpu.matmul %30, %32, %cst_32 {dimension_numbers = #tpu.dot_dimension_numbers<[1], [0], [0], [1], [0, 0, 1, 1], [], []>} : vector<16x128xf32>, vector<128x128xf32>, vector<16x128xf32> -> vector<16x128xf32>
    %c1_33 = arith.constant 1 : index
    %c1_34 = arith.constant 1 : index
    %c0_35 = arith.constant 0 : index
    %34 = vector.load %arg6[%c1_33, %c1_34, %c0_35] : memref<2x18x128xf32, #tpu.memory_space<vmem>>, vector<1x16x128xf32>
    %35 = vector.shape_cast %34 : vector<1x16x128xf32> to vector<16x128xf32>
    %c0_36 = arith.constant 0 : index
    %c1_37 = arith.constant 1 : index
    %c0_38 = arith.constant 0 : index
    %c0_39 = arith.constant 0 : index
    %36 = vector.load %arg2[%c0_36, %c1_37, %c0_38, %c0_39] : memref<1x3x128x128xf32, #tpu.memory_space<vmem>>, vector<1x1x128x128xf32>
    %37 = vector.shape_cast %36 : vector<1x1x128x128xf32> to vector<128x128xf32>
    %cst_40 = arith.constant dense<0.000000e+00> : vector<16x128xf32>
    %38 = tpu.matmul %35, %37, %cst_40 {dimension_numbers = #tpu.dot_dimension_numbers<[1], [0], [0], [1], [0, 0, 1, 1], [], []>} : vector<16x128xf32>, vector<128x128xf32>, vector<16x128xf32> -> vector<16x128xf32>
    %39 = arith.addf %33, %38 : vector<16x128xf32>
    %c1_41 = arith.constant 1 : index
    %c2_42 = arith.constant 2 : index
    %c0_43 = arith.constant 0 : index
    %40 = vector.load %arg6[%c1_41, %c2_42, %c0_43] : memref<2x18x128xf32, #tpu.memory_space<vmem>>, vector<1x16x128xf32>
    %41 = vector.shape_cast %40 : vector<1x16x128xf32> to vector<16x128xf32>
    %c0_44 = arith.constant 0 : index
    %c2_45 = arith.constant 2 : index
    %c0_46 = arith.constant 0 : index
    %c0_47 = arith.constant 0 : index
    %42 = vector.load %arg2[%c0_44, %c2_45, %c0_46, %c0_47] : memref<1x3x128x128xf32, #tpu.memory_space<vmem>>, vector<1x1x128x128xf32>
    %43 = vector.shape_cast %42 : vector<1x1x128x128xf32> to vector<128x128xf32>
    %cst_48 = arith.constant dense<0.000000e+00> : vector<16x128xf32>
    %44 = tpu.matmul %41, %43, %cst_48 {dimension_numbers = #tpu.dot_dimension_numbers<[1], [0], [0], [1], [0, 0, 1, 1], [], []>} : vector<16x128xf32>, vector<128x128xf32>, vector<16x128xf32> -> vector<16x128xf32>
    %45 = arith.addf %39, %44 : vector<16x128xf32>
    %cst_49 = arith.constant dense<0.000000e+00> : vector<128xf32>
    %46 = vector.multi_reduction <add>, %45, %cst_49 [0] : vector<16x128xf32> to vector<128xf32>
    %47 = vector.shape_cast %46 : vector<128xf32> to vector<1x128xf32>
    %48 = arith.addf %24, %47 : vector<1x128xf32>
    %49 = arith.mulf %45, %45 : vector<16x128xf32>
    %cst_50 = arith.constant dense<0.000000e+00> : vector<128xf32>
    %50 = vector.multi_reduction <add>, %49, %cst_50 [0] : vector<16x128xf32> to vector<128xf32>
    %51 = vector.shape_cast %50 : vector<128xf32> to vector<1x128xf32>
    %52 = arith.addf %28, %51 : vector<1x128xf32>
    %c8_i32 = arith.constant 8 : i32
    %53 = tpu.dynamic_rotate %48 by %c8_i32 dim 1 : vector<1x128xf32>, i32 -> vector<1x128xf32>
    %54 = arith.addf %48, %53 : vector<1x128xf32>
    %c16_i32 = arith.constant 16 : i32
    %55 = tpu.dynamic_rotate %54 by %c16_i32 dim 1 : vector<1x128xf32>, i32 -> vector<1x128xf32>
    %56 = arith.addf %54, %55 : vector<1x128xf32>
    %c32_i32 = arith.constant 32 : i32
    %57 = tpu.dynamic_rotate %56 by %c32_i32 dim 1 : vector<1x128xf32>, i32 -> vector<1x128xf32>
    %58 = arith.addf %56, %57 : vector<1x128xf32>
    %c64_i32 = arith.constant 64 : i32
    %59 = tpu.dynamic_rotate %58 by %c64_i32 dim 1 : vector<1x128xf32>, i32 -> vector<1x128xf32>
    %60 = arith.addf %58, %59 : vector<1x128xf32>
    %c8_i32_51 = arith.constant 8 : i32
    %61 = tpu.dynamic_rotate %52 by %c8_i32_51 dim 1 : vector<1x128xf32>, i32 -> vector<1x128xf32>
    %62 = arith.addf %52, %61 : vector<1x128xf32>
    %c16_i32_52 = arith.constant 16 : i32
    %63 = tpu.dynamic_rotate %62 by %c16_i32_52 dim 1 : vector<1x128xf32>, i32 -> vector<1x128xf32>
    %64 = arith.addf %62, %63 : vector<1x128xf32>
    %c32_i32_53 = arith.constant 32 : i32
    %65 = tpu.dynamic_rotate %64 by %c32_i32_53 dim 1 : vector<1x128xf32>, i32 -> vector<1x128xf32>
    %66 = arith.addf %64, %65 : vector<1x128xf32>
    %c64_i32_54 = arith.constant 64 : i32
    %67 = tpu.dynamic_rotate %66 by %c64_i32_54 dim 1 : vector<1x128xf32>, i32 -> vector<1x128xf32>
    %68 = arith.addf %66, %67 : vector<1x128xf32>
    %cst_55 = arith.constant 0.001953125 : f32
    %69 = vector.broadcast %cst_55 : f32 to vector<1x128xf32>
    %70 = arith.mulf %60, %69 : vector<1x128xf32>
    %cst_56 = arith.constant 0.001953125 : f32
    %71 = vector.broadcast %cst_56 : f32 to vector<1x128xf32>
    %72 = arith.mulf %68, %71 : vector<1x128xf32>
    %73 = arith.mulf %70, %70 : vector<1x128xf32>
    %74 = arith.subf %72, %73 : vector<1x128xf32>
    %c0_57 = arith.constant 0 : index
    %c0_58 = arith.constant 0 : index
    %c0_59 = arith.constant 0 : index
    %75 = vector.load %arg3[%c0_57, %c0_58, %c0_59] : memref<1x1x128xf32, #tpu.memory_space<vmem>>, vector<1x1x128xf32>
    %76 = vector.shape_cast %75 : vector<1x1x128xf32> to vector<1x128xf32>
    %cst_60 = arith.constant 9.99999974E-6 : f32
    %77 = vector.broadcast %cst_60 : f32 to vector<1x128xf32>
    %78 = arith.addf %74, %77 : vector<1x128xf32>
    %79 = math.rsqrt %78 : vector<1x128xf32>
    %80 = arith.mulf %76, %79 : vector<1x128xf32>
    %c0_61 = arith.constant 0 : index
    %c0_62 = arith.constant 0 : index
    %c0_63 = arith.constant 0 : index
    %81 = vector.load %arg4[%c0_61, %c0_62, %c0_63] : memref<1x1x128xf32, #tpu.memory_space<vmem>>, vector<1x1x128xf32>
    %82 = vector.shape_cast %81 : vector<1x1x128xf32> to vector<1x128xf32>
    %83 = arith.mulf %70, %80 : vector<1x128xf32>
    %84 = arith.subf %82, %83 : vector<1x128xf32>
    %85 = vector.broadcast %80 : vector<1x128xf32> to vector<16x128xf32>
    %86 = arith.mulf %21, %85 : vector<16x128xf32>
    %87 = vector.broadcast %84 : vector<1x128xf32> to vector<16x128xf32>
    %88 = arith.addf %86, %87 : vector<16x128xf32>
    %cst_64 = arith.constant 0.000000e+00 : f32
    %89 = vector.broadcast %cst_64 : f32 to vector<16x128xf32>
    %90 = arith.maximumf %88, %89 : vector<16x128xf32>
    %91 = vector.broadcast %80 : vector<1x128xf32> to vector<16x128xf32>
    %92 = arith.mulf %45, %91 : vector<16x128xf32>
    %93 = vector.broadcast %84 : vector<1x128xf32> to vector<16x128xf32>
    %94 = arith.addf %92, %93 : vector<16x128xf32>
    %cst_65 = arith.constant 0.000000e+00 : f32
    %95 = vector.broadcast %cst_65 : f32 to vector<16x128xf32>
    %96 = arith.maximumf %94, %95 : vector<16x128xf32>
    %c1_i32 = arith.constant 1 : i32
    %97 = arith.cmpi slt, %arg0, %c1_i32 : i32
    %98 = arith.extui %97 : i1 to i32
    %c0_i32_66 = arith.constant 0 : i32
    %99 = arith.cmpi ne, %98, %c0_i32_66 : i32
    scf.if %99 {
      %c0_69 = arith.constant 0 : index
      %c1_70 = arith.constant 1 : index
      %c0_71 = arith.constant 0 : index
      %103 = vector.load %arg6[%c0_69, %c1_70, %c0_71] : memref<2x18x128xf32, #tpu.memory_space<vmem>>, vector<1x16x128xf32>
      %104 = vector.shape_cast %103 : vector<1x16x128xf32> to vector<16x128xf32>
      %105 = vector.shape_cast %90 : vector<16x128xf32> to vector<1x16x128xf32>
      tpu.vector_store %arg6[%c0_69, %c1_70, %c0_71], %105 {strides = array<i32>} : memref<2x18x128xf32, #tpu.memory_space<vmem>>, vector<1x16x128xf32>,
      %c1_72 = arith.constant 1 : index
      %c1_73 = arith.constant 1 : index
      %c0_74 = arith.constant 0 : index
      %106 = vector.load %arg6[%c1_72, %c1_73, %c0_74] : memref<2x18x128xf32, #tpu.memory_space<vmem>>, vector<1x16x128xf32>
      %107 = vector.shape_cast %106 : vector<1x16x128xf32> to vector<16x128xf32>
      %108 = vector.shape_cast %96 : vector<16x128xf32> to vector<1x16x128xf32>
      tpu.vector_store %arg6[%c1_72, %c1_73, %c0_74], %108 {strides = array<i32>} : memref<2x18x128xf32, #tpu.memory_space<vmem>>, vector<1x16x128xf32>,
    } else {
    }
    %c1_i32_67 = arith.constant 1 : i32
    %100 = arith.cmpi eq, %arg0, %c1_i32_67 : i32
    %101 = arith.extui %100 : i1 to i32
    %c0_i32_68 = arith.constant 0 : i32
    %102 = arith.cmpi ne, %101, %c0_i32_68 : i32
    scf.if %102 {
      %c0_69 = arith.constant 0 : index
      %c0_70 = arith.constant 0 : index
      %c0_71 = arith.constant 0 : index
      %103 = vector.load %arg5[%c0_69, %c0_70, %c0_71] : memref<2x16x128xf32, #tpu.memory_space<vmem>>, vector<1x16x128xf32>
      %104 = vector.shape_cast %103 : vector<1x16x128xf32> to vector<16x128xf32>
      %105 = vector.shape_cast %90 : vector<16x128xf32> to vector<1x16x128xf32>
      tpu.vector_store %arg5[%c0_69, %c0_70, %c0_71], %105 {strides = array<i32>} : memref<2x16x128xf32, #tpu.memory_space<vmem>>, vector<1x16x128xf32>,
      %c1_72 = arith.constant 1 : index
      %c0_73 = arith.constant 0 : index
      %c0_74 = arith.constant 0 : index
      %106 = vector.load %arg5[%c1_72, %c0_73, %c0_74] : memref<2x16x128xf32, #tpu.memory_space<vmem>>, vector<1x16x128xf32>
      %107 = vector.shape_cast %106 : vector<1x16x128xf32> to vector<16x128xf32>
      %108 = vector.shape_cast %96 : vector<16x128xf32> to vector<1x16x128xf32>
      tpu.vector_store %arg5[%c1_72, %c0_73, %c0_74], %108 {strides = array<i32>} : memref<2x16x128xf32, #tpu.memory_space<vmem>>, vector<1x16x128xf32>,
    } else {
    }
    return
  }
  func.func @transform_0(%arg0: i32) -> (i32, i32, i32) {
    %c0_i32 = arith.constant 0 : i32
    %c0_i32_0 = arith.constant 0 : i32
    %c0_i32_1 = arith.constant 0 : i32
    %c0_i32_2 = arith.constant 0 : i32
    return %c0_i32, %c0_i32_0, %c0_i32_1 : i32, i32, i32
  }
  func.func @transform_1(%arg0: i32) -> (i32, i32, i32, i32) {
    %c0_i32 = arith.constant 0 : i32
    %c0_i32_0 = arith.constant 0 : i32
    %c0_i32_1 = arith.constant 0 : i32
    %c0_i32_2 = arith.constant 0 : i32
    return %arg0, %c0_i32, %c0_i32_0, %c0_i32_1 : i32, i32, i32, i32
  }
  func.func @transform_2(%arg0: i32) -> (i32, i32, i32) {
    %c0_i32 = arith.constant 0 : i32
    %c0_i32_0 = arith.constant 0 : i32
    %c0_i32_1 = arith.constant 0 : i32
    return %arg0, %c0_i32, %c0_i32_0 : i32, i32, i32
  }
  func.func @transform_3(%arg0: i32) -> (i32, i32, i32) {
    %c0_i32 = arith.constant 0 : i32
    %c0_i32_0 = arith.constant 0 : i32
    %c0_i32_1 = arith.constant 0 : i32
    return %arg0, %c0_i32, %c0_i32_0 : i32, i32, i32
  }
  func.func @transform_4(%arg0: i32) -> (i32, i32, i32) {
    %c0_i32 = arith.constant 0 : i32
    %c0_i32_0 = arith.constant 0 : i32
    %c0_i32_1 = arith.constant 0 : i32
    %c0_i32_2 = arith.constant 0 : i32
    return %c0_i32, %c0_i32_0, %c0_i32_1 : i32, i32, i32
  }
}

</mosaic_0001>

<bundles_post_ra>
// kernel: tile.23
= control target key start
LH: loop header
LB: loop body
LE: loop exit
PB: predicated region body
PF: predicated region fallthrough
CT: control target
= control target key end

     0   :  { %s28_s0 = inlined_call_operand.vmem [shape: f32[8], index: 0, kind: input, shape index: {}]   ;;  %s29_s1 = inlined_call_operand.vmem [shape: f32[16,8], index: 1, kind: output, shape index: {}]  }
   0x1   :  { %v4_v0 = vld [vmem:[%s28_s0] ss:$0 sm:$0xff] }
   0x2   :  { %5 = vst [vmem:[%s29_s1] sm:$0xff] %v4_v0  ;;  %8 = vst [vmem:[%s29_s1 + $0x8] sm:$0xff] %v4_v0 }

// kernel: tile.36
= control target key start
LH: loop header
LB: loop body
LE: loop exit
PB: predicated region body
PF: predicated region fallthrough
CT: control target
= control target key end

     0   :  { %s131_s10 = smov 120   ;;  %s132_s11 = smov 104   ;;  %vm3_vm0 = vcmask 64512   ;;  %vm9_vm1 = vcmask 1048512   ;;  %vm15_vm2 = vcmask 982912   ;;  %vm21_vm3 = vcmask 917312   ;;  %s207_s0 = inlined_call_operand.vmem [shape: f32[16,8], index: 0, kind: input, shape index: {}]   ;;  %s208_s1 = inlined_call_operand.vmem [shape: f32[1,1,128], index: 1, kind: output, shape index: {}]  }
   0x1   :  { %v101_v0 = vld [vmem:[%s207_s0 + $0xf] sm:$0x1]   ;;  %v103_v1 = vld [vmem:[%s207_s0 + $0xd] sm:$0x1]   ;;  %v102_v2 = vld [vmem:[%s207_s0 + $0xe] sm:$0x1]  }
   0x2   :  { %7 = vrot.lane.b32.xlu0 %v101_v0, %s131_s10  ;;  %19 = vrot.lane.b32.xlu1 %v103_v1, %s132_s11  ;;  %v104_v3 = vld [vmem:[%s207_s0 + $0xc] sm:$0x1]   ;;  %s133_s16 = smov 112   ;;  %s134_s17 = smov 96   ;;  %v105_v4 = vld [vmem:[%s207_s0 + $0xb] sm:$0x1]  }
   0x3   :  { %v106_v5 = vld [vmem:[%s207_s0 + $0xa] sm:$0x1]   ;;  %v2_v6 = vld [vmem:[%s207_s0] sm:$0x1]   ;;  %s135_s24 = smov 88   ;;  %s136_s25 = smov 80  }
   0x4   :  { %4 = vst.msk [vmem:[#allocation0] sm:$0x1] %vm3_vm0, %v2_v6   ;;  %v107_v7 = vld [vmem:[%s207_s0 + $0x9] sm:$0x1]   ;;  %v108_v8 = vld [vmem:[%s207_s0 + $0x8] sm:$0x1]  }
   0x5   :  { %s137_s30 = smov 72   ;;  %s138_s2 = smov 64   ;;  %v109_v9 = vld [vmem:[%s207_s0 + $0x7] sm:$0x1]   ;;  %v110_v10 = vld [vmem:[%s207_s0 + $0x6] sm:$0x1]  }
   0x6   :  { %13 = vrot.lane.b32.xlu0 %v102_v2, %s133_s16  ;;  %25 = vrot.lane.b32.xlu1 %v104_v3, %s134_s17  ;;  %s139_s7 = smov 56   ;;  %s140_s8 = smov 48   ;;  %v111_v11 = vld [vmem:[%s207_s0 + $0x5] sm:$0x1]   ;;  %v112_v12 = vld [vmem:[%s207_s0 + $0x4] sm:$0x1]  }
   0x7   :  { %s141_s13 = smov 40   ;;  %s142_s14 = smov 32   ;;  %v113_v13 = vld [vmem:[%s207_s0 + $0x3] sm:$0x1]   ;;  %v114_v14 = vld [vmem:[%s207_s0 + $0x2] sm:$0x1]  }
   0x8   :  { %s143_s19 = smov 24   ;;  %s144_s20 = smov 16   ;;  %v115_v15 = vld [vmem:[%s207_s0 + $0x1] sm:$0x1]   ;;  %vm27_vm4 = vcmask 851712   ;;  %vm33_vm5 = vcmask 786112  }
   0x9   :  { %s145_s0 = smov 8   ;;  %vm39_vm6 = vcmask 720512   ;;  %vm45_vm7 = vcmask 654912   ;;  %vm51_vm8 = vcmask 589312   ;;  %vm57_vm9 = vcmask 523712  }
   0xa   :  { %31 = vrot.lane.b32.xlu0 %v105_v4, %s135_s24  ;;  %37 = vrot.lane.b32.xlu1 %v106_v5, %s136_s25  ;;  %vm63_vm10 = vcmask 458112   ;;  %vm69_vm11 = vcmask 392512   ;;  %vm75_vm12 = vcmask 326912   ;;  %vm81_vm13 = vcmask 261312  }
   0xb   :  { %vm87_vm14 = vcmask 195712   ;;  %vm93_vm15 = vcmask 130112  }
   0xe   :  { %43 = vrot.lane.b32.xlu0 %v107_v7, %s137_s30  ;;  %49 = vrot.lane.b32.xlu1 %v108_v8, %s138_s2 }
  0x12   :  { %55 = vrot.lane.b32.xlu0 %v109_v9, %s139_s7  ;;  %61 = vrot.lane.b32.xlu1 %v110_v10, %s140_s8 }
  0x16   :  { %67 = vrot.lane.b32.xlu0 %v111_v11, %s141_s13  ;;  %73 = vrot.lane.b32.xlu1 %v112_v12, %s142_s14 }
  0x1a   :  { %79 = vrot.lane.b32.xlu0 %v113_v13, %s143_s19  ;;  %85 = vrot.lane.b32.xlu1 %v114_v14, %s144_s20 }
  0x1e   :  { %91 = vrot.lane.b32.xlu0 %v115_v15, %s145_s0 }
  0x74   :  { %v8_v16 = vpop.permute.xlu0 %7   ;;  %v20_v17 = vpop.permute.xlu1 %19  }
  0x75   :  { %10 = vst.msk [vmem:[#allocation0] sm:$0x1] %vm9_vm1, %v8_v16  }
  0x78   :  { %v14_v18 = vpop.permute.xlu0 %13   ;;  %v26_v19 = vpop.permute.xlu1 %25  }
  0x79   :  { %16 = vst.msk [vmem:[#allocation0] sm:$0x1] %vm15_vm2, %v14_v18  }
  0x7a   :  { %22 = vst.msk [vmem:[#allocation0] sm:$0x1] %vm21_vm3, %v20_v17  }
  0x7b   :  { %28 = vst.msk [vmem:[#allocation0] sm:$0x1] %vm27_vm4, %v26_v19  }
  0x7c   :  { %v32_v20 = vpop.permute.xlu0 %31   ;;  %v38_v21 = vpop.permute.xlu1 %37  }
  0x7d   :  { %34 = vst.msk [vmem:[#allocation0] sm:$0x1] %vm33_vm5, %v32_v20  }
  0x7e   :  { %40 = vst.msk [vmem:[#allocation0] sm:$0x1] %vm39_vm6, %v38_v21  }
  0x80   :  { %v44_v22 = vpop.permute.xlu0 %43   ;;  %v50_v23 = vpop.permute.xlu1 %49  }
  0x81   :  { %46 = vst.msk [vmem:[#allocation0] sm:$0x1] %vm45_vm7, %v44_v22  }
  0x82   :  { %52 = vst.msk [vmem:[#allocation0] sm:$0x1] %vm51_vm8, %v50_v23  }
  0x84   :  { %v56_v24 = vpop.permute.xlu0 %55   ;;  %v62_v25 = vpop.permute.xlu1 %61  }
  0x85   :  { %58 = vst.msk [vmem:[#allocation0] sm:$0x1] %vm57_vm9, %v56_v24  }
  0x86   :  { %64 = vst.msk [vmem:[#allocation0] sm:$0x1] %vm63_vm10, %v62_v25  }
  0x88   :  { %v68_v26 = vpop.permute.xlu0 %67   ;;  %v74_v27 = vpop.permute.xlu1 %73  }
  0x89   :  { %70 = vst.msk [vmem:[#allocation0] sm:$0x1] %vm69_vm11, %v68_v26  }
  0x8a   :  { %76 = vst.msk [vmem:[#allocation0] sm:$0x1] %vm75_vm12, %v74_v27  }
  0x8c   :  { %v80_v28 = vpop.permute.xlu0 %79   ;;  %v86_v29 = vpop.permute.xlu1 %85  }
  0x8d   :  { %82 = vst.msk [vmem:[#allocation0] sm:$0x1] %vm81_vm13, %v80_v28  }
  0x8e   :  { %88 = vst.msk [vmem:[#allocation0] sm:$0x1] %vm87_vm14, %v86_v29  }
  0x90   :  { %v92_v30 = vpop.permute.xlu0 %91  }
  0x91   :  { %94 = vst.msk [vmem:[#allocation0] sm:$0x1] %vm93_vm15, %v92_v30  }
  0x98   :  { %v98_v31 = vld [vmem:[#allocation0] sm:$0x1] }
  0x99   :  { %100 = vst [vmem:[%s208_s1] sm:$0x1] %v98_v31 }

// kernel: hrfe_forward.1
= control target key start
LH: loop header
LB: loop body
LE: loop exit
PB: predicated region body
PF: predicated region fallthrough
CT: control target
= control target key end

     0   :  { %s1520_s15 = smov 0   ;;  %s1660_s0 = inlined_call_operand.vmem [shape: f32[2,16,128], index: 0, kind: input, shape index: {}]   ;;  %s1661_s1 = inlined_call_operand.vmem [shape: f32[2,3,128,128], index: 1, kind: input, shape index: {}]   ;;  %s1662_s2 = inlined_call_operand.vmem [shape: f32[2,1,128], index: 2, kind: input, shape index: {}]   ;;  %s1663_s3 = inlined_call_operand.vmem [shape: f32[2,1,128], index: 3, kind: input, shape index: {}]   ;;  %s1664_s4 = inlined_call_operand.vmem [shape: f32[2,16,128], index: 4, kind: output, shape index: {}]  }
   0x1 LB: > { %s1526_s16 = sadd.s32 4294967295, %s1488_s15   ;;  %p907_p0 = scmp.ge.s32.totalorder %s1488_s15, 1  ;;  %s1488_s15 = sphi %s1520_s15, %s14_s15  }
   0x2   : > { %p173_p1 = scmp.lt.s32.totalorder %s1488_s15, 3 }
   0x4   : > { %p174_p2 = pnand %p907_p0, %p173_p1 }
   0x5   : > { %p200_p3 = scmp.lt.s32.totalorder (!%p174_p2), %s1526_s16, 1  ;;  %p909_p4 = scmp.ne.s32.totalorder (!%p174_p2), %s1526_s16, 0 }
   0x6   : > { %177 = sbr.rel (%p174_p2) target bundleno = 861 (0x35d), region = 36 }
   0xd   : > { %s1532_s17 = scalar_select %p200_p3, %s1526_s16, 1 }
   0xe   : > { %214 = sbr.rel (%p909_p4) target bundleno = 21 (0x15), region = 40  ;;  %v221_v0 = vld [vmem:[%s1660_s0] sm:$0xff] (!%p909_p4)  ;;  %v222_v1 = vld [vmem:[%s1660_s0 + $0x8] sm:$0xff] (!%p909_p4)  ;;  %v223_v2 = vld [vmem:[%s1660_s0 + $0x10] sm:$0xff] (!%p909_p4)  ;;  %v1490_v3 = vmov (!%p909_p4), 0.0  }
   0xf   : > { %s1466_s18 = smul.u32 384, %s1532_s17  ;;  %s207_s21 = scalar_lea.vmem %s1662_s2, %s1532_s17  ;;  %215 = vst [vmem:[#allocation2] sm:$0xff] (!%p909_p4), %v1490_v3  ;;  %216 = vst [vmem:[#allocation2 + $0x8] sm:$0xff] (!%p909_p4), %v1490_v3  ;;  %v224_v4 = vld [vmem:[%s1660_s0 + $0x18] sm:$0xff] (!%p909_p4) }
  0x10   : > { %s210_s24 = scalar_lea.vmem %s1663_s3, %s1532_s17  ;;  %217 = vst [vmem:[#allocation2 + $0x10] sm:$0x3] (!%p909_p4), %v1490_v3  ;;  %218 = vst [vmem:[#allocation2 + $0x18] sm:$0xff] (!%p909_p4), %v1490_v3 }
  0x11   : > { %s1546_s27 = scalar_lea.vmem %s1661_s1, %s1466_s18  ;;  %219 = vst [vmem:[#allocation2 + $0x20] sm:$0xff] (!%p909_p4), %v1490_v3  ;;  %220 = vst [vmem:[#allocation2 + $0x28] sm:$0x3] (!%p909_p4), %v1490_v3 }
  0x12   : > { %225 = vst [vmem:[#allocation2 + $0x1] sm:$0xff] (!%p909_p4), %v221_v0  ;;  %226 = vst [vmem:[#allocation2 + $0x9] sm:$0xff] (!%p909_p4), %v222_v1 }
  0x13   : > { %227 = vst [vmem:[#allocation2 + $0x19] sm:$0xff] (!%p909_p4), %v223_v2  ;;  %228 = vst [vmem:[#allocation2 + $0x21] sm:$0xff] (!%p909_p4), %v224_v4 }
  0x15 PF: > { %v910_v5 = vld [vmem:[%s1546_s27 + $0x80] sm:$0xff]  ;;  %v911_v6 = vld [vmem:[%s1546_s27 + $0x88] sm:$0xff]  ;;  %v912_v7 = vld [vmem:[%s1546_s27 + $0x90] sm:$0xff]  ;;  %s1491_s10 = smov 8   ;;  %s1492_s11 = smov 16  }
  0x16   : > { %v1266_v8 = vpack.c.bf16 %v911_v6, %v910_v5  ;;  %v913_v9 = vld [vmem:[%s1546_s27 + $0x98] sm:$0xff]  ;;  %v914_v11 = vld [vmem:[%s1546_s27 + $0xa0] sm:$0xff]  ;;  %v915_v12 = vld [vmem:[%s1546_s27 + $0xa8] sm:$0xff]  ;;  %s1493_s12 = smov 32   ;;  %s1494_s13 = smov 64  }
  0x17   : > { %v1270_v10 = vpack.c.bf16 %v913_v9, %v912_v7  ;;  %v1274_v13 = vpack.c.bf16 %v915_v12, %v914_v11  ;;  %v916_v15 = vld [vmem:[%s1546_s27 + $0xb0] sm:$0xff]  ;;  %v917_v16 = vld [vmem:[%s1546_s27 + $0xb8] sm:$0xff]  ;;  %v918_v19 = vld [vmem:[%s1546_s27 + $0xc0] sm:$0xff]  ;;  %p942_p5 = scmp.ge.s32.totalorder %s1526_s16, 1 }
  0x18   : > { %1267 = vmatprep.subr.bf16.mxu0 %v1266_v8  ;;  %1363 = vmatprep.subr.bf16.mxu1 %v1266_v8  ;;  %v1278_v18 = vpack.c.bf16 %v917_v16, %v916_v15  ;;  %v919_v20 = vld [vmem:[%s1546_s27 + $0xc8] sm:$0xff]  ;;  %v920_v22 = vld [vmem:[%s1546_s27 + $0xd0] sm:$0xff]  ;;  %v921_v23 = vld [vmem:[%s1546_s27 + $0xd8] sm:$0xff] }
  0x19   : > { %1269 = vmatpush3.bf16.msra.mxu0 %v1266_v8  ;;  %1365 = vmatpush3.bf16.msra.mxu1 %v1266_v8  ;;  %v247_v14 = vld [vmem:[#allocation2 + $0x1] sm:$0xff]  ;;  %v1282_v21 = vpack.c.bf16 %v919_v20, %v918_v19  ;;  %v1286_v24 = vpack.c.bf16 %v921_v23, %v920_v22  ;;  %v924_v28 = vld [vmem:[%s1546_s27 + $0xf0] sm:$0xff]  ;;  %v925_v29 = vld [vmem:[%s1546_s27 + $0xf8] sm:$0xff] }
  0x1a   : > { %1271 = vmatprep.subr.bf16.mxu0 %v1270_v10  ;;  %1367 = vmatprep.subr.bf16.mxu1 %v1270_v10  ;;  %v533_v17 = vld [vmem:[#allocation2 + $0x19] sm:$0xff]  ;;  %v923_v26 = vld [vmem:[%s1546_s27 + $0xe8] sm:$0xff]  ;;  %v1294_v30 = vpack.c.bf16 %v925_v29, %v924_v28  ;;  %v233_v34 = vld [vmem:[%s1546_s27 + $0x10] sm:$0xff] }
  0x1b   : > { %1088 = vmatprep.mubr.f32.mxu0 %v247_v14  ;;  %1193 = vmatprep.mubr.f32.mxu1 %v533_v17  ;;  %v922_v25 = vld [vmem:[%s1546_s27 + $0xe0] sm:$0xff]  ;;  %v232_v32 = vld [vmem:[%s1546_s27 + $0x8] sm:$0xff]  ;;  %v234_v35 = vld [vmem:[%s1546_s27 + $0x18] sm:$0xff] }
  0x1c   : > { %v1290_v27 = vpack.c.bf16 %v923_v26, %v922_v25  ;;  %v231_v31 = vld [vmem:[%s1546_s27] sm:$0xff]  ;;  %v248_v36 = vld [vmem:[#allocation2 + $0x9] sm:$0xff]  ;;  %v1302_v38 = vpack.c.bf16 %v234_v35, %v233_v34  ;;  %v531_v42 = vld [vmem:[#allocation2 + $0x18] sm:$0xff] }
  0x1d   : > { %1273 = vmatpush3.bf16.msra.mxu0 %v1270_v10  ;;  %1369 = vmatpush3.bf16.msra.mxu1 %v1270_v10  ;;  %v1298_v33 = vpack.c.bf16 %v232_v32, %v231_v31  ;;  %v534_v37 = vld [vmem:[#allocation2 + $0x21] sm:$0xff]  ;;  %v237_v44 = vld [vmem:[%s1546_s27 + $0x30] sm:$0xff]  ;;  %v238_v45 = vld [vmem:[%s1546_s27 + $0x38] sm:$0xff] }
  0x1e   : > { %1275 = vmatprep.subr.bf16.mxu0 %v1274_v13  ;;  %1371 = vmatprep.subr.bf16.mxu1 %v1274_v13  ;;  %v235_v39 = vld [vmem:[%s1546_s27 + $0x20] sm:$0xff]  ;;  %v236_v40 = vld [vmem:[%s1546_s27 + $0x28] sm:$0xff]  ;;  %v1310_v46 = vpack.c.bf16 %v238_v45, %v237_v44  ;;  %v241_v50 = vld [vmem:[%s1546_s27 + $0x50] sm:$0xff] }
  0x1f   : > { %v229_v41 = vld [vmem:[#allocation2] sm:$0xff]  ;;  %v1306_v43 = vpack.c.bf16 %v236_v40, %v235_v39  ;;  %v240_v48 = vld [vmem:[%s1546_s27 + $0x48] sm:$0xff]  ;;  %v242_v51 = vld [vmem:[%s1546_s27 + $0x58] sm:$0xff] }
  0x20   : > { %v239_v47 = vld [vmem:[%s1546_s27 + $0x40] sm:$0xff]  ;;  %v1318_v52 = vpack.c.bf16 %v242_v51, %v241_v50  ;;  %v244_v54 = vld [vmem:[%s1546_s27 + $0x68] sm:$0xff]  ;;  %v245_v56 = vld [vmem:[%s1546_s27 + $0x70] sm:$0xff] }
  0x21   : > { %1277 = vmatpush3.bf16.msra.mxu0 %v1274_v13  ;;  %1373 = vmatpush3.bf16.msra.mxu1 %v1274_v13  ;;  %v1314_v49 = vpack.c.bf16 %v240_v48, %v239_v47  ;;  %v243_v53 = vld [vmem:[%s1546_s27 + $0x60] sm:$0xff]  ;;  %v246_v57 = vld [vmem:[%s1546_s27 + $0x78] sm:$0xff]  ;;  %v927_v60 = vld [vmem:[%s1546_s27 + $0x108] sm:$0xff] }
  0x22   : > { %1279 = vmatprep.subr.bf16.mxu0 %v1278_v18  ;;  %1375 = vmatprep.subr.bf16.mxu1 %v1278_v18  ;;  %v1322_v55 = vpack.c.bf16 %v244_v54, %v243_v53  ;;  %v1326_v58 = vpack.c.bf16 %v246_v57, %v245_v56  ;;  %v926_v59 = vld [vmem:[%s1546_s27 + $0x100] sm:$0xff]  ;;  %v928_v62 = vld [vmem:[%s1546_s27 + $0x110] sm:$0xff]  ;;  %v929_v63 = vld [vmem:[%s1546_s27 + $0x118] sm:$0xff] }
  0x23   : > { %v1330_v61 = vpack.c.bf16 %v927_v60, %v926_v59  ;;  %v230_v0 = vld [vmem:[#allocation2 + $0x8] sm:$0xff]  ;;  %v532_v1 = vld [vmem:[#allocation2 + $0x20] sm:$0xff]  ;;  %v1334_v2 = vpack.c.bf16 %v929_v63, %v928_v62  ;;  %v932_v8 = vld [vmem:[%s1546_s27 + $0x130] sm:$0xff] }
  0x24   : > { %v930_v3 = vld [vmem:[%s1546_s27 + $0x120] sm:$0xff]  ;;  %v931_v4 = vld [vmem:[%s1546_s27 + $0x128] sm:$0xff]  ;;  %v933_v9 = vld [vmem:[%s1546_s27 + $0x138] sm:$0xff] }
  0x25   : > { %1281 = vmatpush3.bf16.msra.mxu0 %v1278_v18  ;;  %1377 = vmatpush3.bf16.msra.mxu1 %v1278_v18  ;;  %v416_v5 = vld [vmem:[#allocation2 + $0x2] sm:$0xff]  ;;  %v685_v6 = vld [vmem:[#allocation2 + $0x1a] sm:$0xff]  ;;  %v1338_v7 = vpack.c.bf16 %v931_v4, %v930_v3  ;;  %v1342_v10 = vpack.c.bf16 %v933_v9, %v932_v8  ;;  %v936_v14 = vld [vmem:[%s1546_s27 + $0x150] sm:$0xff] }
  0x26   : > { %1283 = vmatprep.subr.bf16.mxu0 %v1282_v21  ;;  %1379 = vmatprep.subr.bf16.mxu1 %v1282_v21  ;;  %v934_v11 = vld [vmem:[%s1546_s27 + $0x140] sm:$0xff]  ;;  %v935_v12 = vld [vmem:[%s1546_s27 + $0x148] sm:$0xff]  ;;  %v937_v15 = vld [vmem:[%s1546_s27 + $0x158] sm:$0xff] }
  0x27   : > { %v1346_v13 = vpack.c.bf16 %v935_v12, %v934_v11  ;;  %v1350_v16 = vpack.c.bf16 %v937_v15, %v936_v14  ;;  %v938_v17 = vld [vmem:[%s1546_s27 + $0x160] sm:$0xff]  ;;  %v939_v18 = vld [vmem:[%s1546_s27 + $0x168] sm:$0xff]  ;;  %v940_v20 = vld [vmem:[%s1546_s27 + $0x170] sm:$0xff] }
  0x28   : > { %v1354_v19 = vpack.c.bf16 %v939_v18, %v938_v17  ;;  %v417_v23 = vld [vmem:[#allocation2 + $0xa] sm:$0xff] }
  0x29   : > { %1285 = vmatpush3.bf16.msra.mxu0 %v1282_v21  ;;  %1381 = vmatpush3.bf16.msra.mxu1 %v1282_v21  ;;  %v941_v21 = vld [vmem:[%s1546_s27 + $0x178] sm:$0xff] }
  0x2a   : > { %1287 = vmatprep.subr.bf16.mxu0 %v1286_v24  ;;  %1383 = vmatprep.subr.bf16.mxu1 %v1286_v24  ;;  %v1358_v22 = vpack.c.bf16 %v941_v21, %v940_v20  ;;  %v818_v20 = vlaneseq }
  0x2c   : > { %v819_v21 = vshrl.u32 %v818_v20, 7 }
  0x2d   : > { %1289 = vmatpush3.bf16.msra.mxu0 %v1286_v24  ;;  %1385 = vmatpush3.bf16.msra.mxu1 %v1286_v24  ;;  %v686_v24 = vld [vmem:[#allocation2 + $0x22] sm:$0xff] }
  0x2e   : > { %1291 = vmatprep.subr.bf16.mxu0 %v1290_v27  ;;  %1387 = vmatprep.subr.bf16.mxu1 %v1290_v27 }
  0x31   : > { %1293 = vmatpush3.bf16.msra.mxu0 %v1290_v27  ;;  %1389 = vmatpush3.bf16.msra.mxu1 %v1290_v27 }
  0x32   : > { %1295 = vmatprep.subr.bf16.mxu0 %v1294_v30  ;;  %1391 = vmatprep.subr.bf16.mxu1 %v1294_v30 }
  0x35   : > { %1297 = vmatpush3.bf16.msra.mxu0 %v1294_v30  ;;  %1393 = vmatpush3.bf16.msra.mxu1 %v1294_v30 }
  0x36   : > { %1299 = vmatprep.subr.bf16.mxu0 %v1298_v33  ;;  %1395 = vmatprep.subr.bf16.mxu1 %v1298_v33 }
  0x38   : > { %1089 = vmatmul.mubr.f32.vlgmr.msra.gmra.mrb[0].mxu0 %v248_v36  ;;  %1194 = vmatmul.mubr.f32.vlgmr.msra.gmra.mrb[0].mxu1 %v534_v37 }
  0x39   : > { %1301 = vmatpush3.bf16.msra.mxu0 %v1298_v33  ;;  %1397 = vmatpush3.bf16.msra.mxu1 %v1298_v33 }
  0x3a   : > { %1303 = vmatprep.subr.bf16.mxu0 %v1302_v38  ;;  %1399 = vmatprep.subr.bf16.mxu1 %v1302_v38 }
  0x3b   : > { %1123 = vmatprep.mubr.f32.mxu0 %v229_v41  ;;  %1228 = vmatprep.mubr.f32.mxu1 %v531_v42 }
  0x3d   : > { %1305 = vmatpush3.bf16.msra.mxu0 %v1302_v38  ;;  %1401 = vmatpush3.bf16.msra.mxu1 %v1302_v38 }
  0x3e   : > { %1307 = vmatprep.subr.bf16.mxu0 %v1306_v43  ;;  %1403 = vmatprep.subr.bf16.mxu1 %v1306_v43 }
  0x41   : > { %1309 = vmatpush3.bf16.msra.mxu0 %v1306_v43  ;;  %1405 = vmatpush3.bf16.msra.mxu1 %v1306_v43 }
  0x42   : > { %1311 = vmatprep.subr.bf16.mxu0 %v1310_v46  ;;  %1407 = vmatprep.subr.bf16.mxu1 %v1310_v46 }
  0x45   : > { %1313 = vmatpush3.bf16.msra.mxu0 %v1310_v46  ;;  %1409 = vmatpush3.bf16.msra.mxu1 %v1310_v46 }
  0x46   : > { %1315 = vmatprep.subr.bf16.mxu0 %v1314_v49  ;;  %1411 = vmatprep.subr.bf16.mxu1 %v1314_v49 }
  0x49   : > { %1317 = vmatpush3.bf16.msra.mxu0 %v1314_v49  ;;  %1413 = vmatpush3.bf16.msra.mxu1 %v1314_v49 }
  0x4a   : > { %1319 = vmatprep.subr.bf16.mxu0 %v1318_v52  ;;  %1415 = vmatprep.subr.bf16.mxu1 %v1318_v52 }
  0x4d   : > { %1321 = vmatpush3.bf16.msra.mxu0 %v1318_v52  ;;  %1417 = vmatpush3.bf16.msra.mxu1 %v1318_v52 }
  0x4e   : > { %1323 = vmatprep.subr.bf16.mxu0 %v1322_v55  ;;  %1419 = vmatprep.subr.bf16.mxu1 %v1322_v55 }
  0x51   : > { %1325 = vmatpush3.bf16.msra.mxu0 %v1322_v55  ;;  %1421 = vmatpush3.bf16.msra.mxu1 %v1322_v55 }
  0x52   : > { %1327 = vmatprep.subr.bf16.mxu0 %v1326_v58  ;;  %1423 = vmatprep.subr.bf16.mxu1 %v1326_v58 }
  0x55   : > { %1329 = vmatpush3.bf16.msra.mxu0 %v1326_v58  ;;  %1425 = vmatpush3.bf16.msra.mxu1 %v1326_v58 }
  0x56   : > { %1331 = vmatprep.subr.bf16.mxu0 %v1330_v61  ;;  %1427 = vmatprep.subr.bf16.mxu1 %v1330_v61 }
  0x58   : > { %1124 = vmatmul.mubr.f32.vlgmr.msra.gmra.mrb[0].mxu0 %v230_v0  ;;  %1229 = vmatmul.mubr.f32.vlgmr.msra.gmra.mrb[0].mxu1 %v532_v1 }
  0x59   : > { %1333 = vmatpush3.bf16.msra.mxu0 %v1330_v61  ;;  %1429 = vmatpush3.bf16.msra.mxu1 %v1330_v61 }
  0x5a   : > { %1335 = vmatprep.subr.bf16.mxu0 %v1334_v2  ;;  %1431 = vmatprep.subr.bf16.mxu1 %v1334_v2 }
  0x5b   : > { %1158 = vmatprep.mubr.f32.mxu0 %v416_v5  ;;  %1263 = vmatprep.mubr.f32.mxu1 %v685_v6 }
  0x5d   : > { %1337 = vmatpush3.bf16.msra.mxu0 %v1334_v2  ;;  %1433 = vmatpush3.bf16.msra.mxu1 %v1334_v2 }
  0x5e   : > { %1339 = vmatprep.subr.bf16.mxu0 %v1338_v7  ;;  %1435 = vmatprep.subr.bf16.mxu1 %v1338_v7 }
  0x61   : > { %1341 = vmatpush3.bf16.msra.mxu0 %v1338_v7  ;;  %1437 = vmatpush3.bf16.msra.mxu1 %v1338_v7 }
  0x62   : > { %1343 = vmatprep.subr.bf16.mxu0 %v1342_v10  ;;  %1439 = vmatprep.subr.bf16.mxu1 %v1342_v10 }
  0x65   : > { %1345 = vmatpush3.bf16.msra.mxu0 %v1342_v10  ;;  %1441 = vmatpush3.bf16.msra.mxu1 %v1342_v10 }
  0x66   : > { %1347 = vmatprep.subr.bf16.mxu0 %v1346_v13  ;;  %1443 = vmatprep.subr.bf16.mxu1 %v1346_v13 }
  0x69   : > { %1349 = vmatpush3.bf16.msra.mxu0 %v1346_v13  ;;  %1445 = vmatpush3.bf16.msra.mxu1 %v1346_v13 }
  0x6a   : > { %1351 = vmatprep.subr.bf16.mxu0 %v1350_v16  ;;  %1447 = vmatprep.subr.bf16.mxu1 %v1350_v16 }
  0x6d   : > { %1353 = vmatpush3.bf16.msra.mxu0 %v1350_v16  ;;  %1449 = vmatpush3.bf16.msra.mxu1 %v1350_v16 }
  0x6e   : > { %1355 = vmatprep.subr.bf16.mxu0 %v1354_v19  ;;  %1451 = vmatprep.subr.bf16.mxu1 %v1354_v19 }
  0x71   : > { %1357 = vmatpush3.bf16.msra.mxu0 %v1354_v19  ;;  %1453 = vmatpush3.bf16.msra.mxu1 %v1354_v19 }
  0x72   : > { %1359 = vmatprep.subr.bf16.mxu0 %v1358_v22  ;;  %1455 = vmatprep.subr.bf16.mxu1 %v1358_v22 }
  0x75   : > { %1361 = vmatpush3.bf16.msra.mxu0 %v1358_v22  ;;  %1457 = vmatpush3.bf16.msra.mxu1 %v1358_v22  ;;  %v810_v22 = vld [vmem:[%s207_s21] sm:$0x1] }
  0x78   : > { %1159 = vmatmul.mubr.f32.vlgmr.msra.gmra.mrb[0].mxu0 %v417_v23  ;;  %1264 = vmatmul.mubr.f32.vlgmr.msra.gmra.mrb[0].mxu1 %v686_v24  ;;  %v820_v23 = vsub.s32 0, %v819_v21 }
 0x14b   : > { %v1609_v25 = vpop.f32.mrb[0].mxu0  ;;  %v1611_v26 = vpop.f32.mrb[0].mxu1 }
 0x14c   : > { %v521_v27 = vmul.f32 %v1609_v25, %v1609_v25  ;;  %v773_v28 = vmul.f32 %v1611_v26, %v1611_v26  ;;  %v1617_v29 = vpop.f32.mrb[1].mxu0  ;;  %v1619_v30 = vpop.f32.mrb[1].mxu1 }
 0x14d   : > { %v512_v31 = vadd.f32 %v1609_v25, %v1617_v29  ;;  %v520_v32 = vmul.f32 %v1617_v29, %v1617_v29  ;;  %v764_v33 = vadd.f32 %v1611_v26, %v1619_v30  ;;  %v772_v34 = vmul.f32 %v1619_v30, %v1619_v30 }
 0x14f   : > { %v513_v35 = vrot.slane %v512_v31, 4  ;;  %v522_v36 = vadd.f32 %v521_v27, %v520_v32  ;;  %v765_v37 = vrot.slane %v764_v33, 4  ;;  %v774_v38 = vadd.f32 %v773_v28, %v772_v34  ;;  %v814_v28 = vld [vmem:[%s210_s24] sm:$0x1] }
 0x151   : > { %v514_v39 = vadd.f32 %v513_v35, %v512_v31  ;;  %v523_v40 = vrot.slane %v522_v36, 4  ;;  %v766_v41 = vadd.f32 %v765_v37, %v764_v33  ;;  %v775_v42 = vrot.slane %v774_v38, 4 }
 0x153   : > { %v515_v43 = vrot.slane %v514_v39, 2  ;;  %v524_v44 = vadd.f32 %v523_v40, %v522_v36  ;;  %v767_v45 = vrot.slane %v766_v41, 2  ;;  %v776_v46 = vadd.f32 %v775_v42, %v774_v38 }
 0x155   : > { %v525_v47 = vrot.slane %v524_v44, 2  ;;  %v777_v48 = vrot.slane %v776_v46, 2  ;;  %v516_v49 = vadd.f32 %v515_v43, %v514_v39  ;;  %v768_v50 = vadd.f32 %v767_v45, %v766_v41 }
 0x157   : > { %v526_v51 = vadd.f32 %v525_v47, %v524_v44  ;;  %v778_v52 = vadd.f32 %v777_v48, %v776_v46  ;;  %v517_v53 = vrot.slane %v516_v49, 1  ;;  %v769_v54 = vrot.slane %v768_v50, 1 }
 0x159   : > { %v518_v55 = vadd.f32 %v517_v53, %v516_v49  ;;  %v770_v56 = vadd.f32 %v769_v54, %v768_v50  ;;  %v527_v57 = vrot.slane %v526_v51, 1  ;;  %v779_v58 = vrot.slane %v778_v52, 1 }
 0x15b   : > { %v771_v59 = vadd.f32 %v770_v56, %v518_v55  ;;  %v528_v60 = vadd.f32 %v527_v57, %v526_v51  ;;  %v780_v61 = vadd.f32 %v779_v58, %v778_v52 }
 0x15d   : > { %782 = vrot.lane.b32.xlu0 %v771_v59, %s1491_s10  ;;  %v781_v62 = vadd.f32 %v780_v61, %v528_v60 }
 0x161   : > { %794 = vrot.lane.b32.xlu0 %v781_v62, %s1491_s10 }
 0x1cf   : > { %v783_v63 = vpop.permute.xlu0 %782 }
 0x1d0   : > { %v784_v0 = vadd.f32 %v783_v63, %v771_v59 }
 0x1d2   : > { %785 = vrot.lane.b32.xlu1 %v784_v0, %s1492_s11 }
 0x1d3   : > { %v795_v1 = vpop.permute.xlu0 %794 }
 0x1d4   : > { %v796_v2 = vadd.f32 %v795_v1, %v781_v62 }
 0x1d6   : > { %797 = vrot.lane.b32.xlu1 %v796_v2, %s1492_s11 }
 0x244   : > { %v786_v3 = vpop.permute.xlu1 %785 }
 0x245   : > { %v787_v4 = vadd.f32 %v786_v3, %v784_v0 }
 0x247   : > { %788 = vrot.lane.b32.xlu0 %v787_v4, %s1493_s12 }
 0x248   : > { %v798_v5 = vpop.permute.xlu1 %797 }
 0x249   : > { %v799_v6 = vadd.f32 %v798_v5, %v796_v2 }
 0x24b   : > { %800 = vrot.lane.b32.xlu1 %v799_v6, %s1493_s12 }
 0x2b9   : > { %v789_v7 = vpop.permute.xlu0 %788 }
 0x2ba   : > { %v790_v8 = vadd.f32 %v789_v7, %v787_v4 }
 0x2bc   : > { %791 = vrot.lane.b32.xlu0 %v790_v8, %s1494_s13 }
 0x2bd   : > { %v801_v9 = vpop.permute.xlu1 %800 }
 0x2be   : > { %v802_v10 = vadd.f32 %v801_v9, %v799_v6 }
 0x2c0   : > { %803 = vrot.lane.b32.xlu1 %v802_v10, %s1494_s13 }
 0x32e   : > { %v792_v11 = vpop.permute.xlu0 %791 }
 0x32f   : > { %v793_v12 = vadd.f32 %v792_v11, %v790_v8 }
 0x331   : > { %v806_v13 = vmul.f32 0.001953125, %v793_v12 }
 0x332   : > { %v804_v14 = vpop.permute.xlu1 %803 }
 0x333   : > { %v805_v15 = vadd.f32 %v804_v14, %v802_v10  ;;  %v808_v16 = vmul.f32 %v806_v13, %v806_v13 }
 0x335   : > { %v807_v17 = vmul.f32 0.001953125, %v805_v15 }
 0x337   : > { %v809_v18 = vsub.f32 %v807_v17, %v808_v16 }
 0x339   : > { %v811_v19 = vadd.f32 1e-05, %v809_v18 }
 0x33b   : > { %1480 = vrsqrt.f32 %v811_v19 }
 0x345   : > { %v1481_v24 = vpop.eup %1480 }
 0x346   : > { %v813_v27 = vmul.f32 %v1481_v24, %v810_v22 }
 0x348   : > { %v815_v31 = vmul.f32 %v813_v27, %v806_v13  ;;  %v821_v32 = vrot.slane %v813_v27, %v820_v23 }
 0x34a   : > { %v816_v33 = vsub.f32 %v814_v28, %v815_v31  ;;  %v823_v34 = vmul.f32 %v821_v32, %v1617_v29  ;;  %v824_v35 = vmul.f32 %v1609_v25, %v821_v32  ;;  %v835_v37 = vmul.f32 %v821_v32, %v1619_v30  ;;  %844 = sbr.rel (%p942_p5) target bundleno = 852 (0x354), region = 44 }
 0x34b   : > { %v836_v38 = vmul.f32 %v1611_v26, %v821_v32 }
 0x34c   : > { %v829_v36 = vrot.slane %v816_v33, %v820_v23 }
 0x34e   : > { %v831_v39 = vadd.f32 %v829_v36, %v823_v34  ;;  %v832_v40 = vadd.f32 %v829_v36, %v824_v35  ;;  %v837_v41 = vadd.f32 %v835_v37, %v829_v36  ;;  %v838_v42 = vadd.f32 %v836_v38, %v829_v36 }
 0x350   : > { %v833_v43 = vmax.f32 %v831_v39, 0.0  ;;  %v834_v44 = vmax.f32 %v832_v40, 0.0  ;;  %v839_v45 = vmax.f32 %v837_v41, 0.0  ;;  %v840_v46 = vmax.f32 %v838_v42, 0.0 }
 0x352   : > { %845 = vst [vmem:[#allocation2 + $0x1] sm:$0xff] %v833_v43  ;;  %846 = vst [vmem:[#allocation2 + $0x9] sm:$0xff] %v834_v44 }
 0x353   : > { %847 = vst [vmem:[#allocation2 + $0x19] sm:$0xff] %v839_v45  ;;  %848 = vst [vmem:[#allocation2 + $0x21] sm:$0xff] %v840_v46 }
 0x354 PF: > { %p943_p6 = scmp.ne.s32.totalorder %s1526_s16, 1 }
 0x355   : > { %853 = vst [vmem:[%s1664_s4] sm:$0xff] (!%p943_p6), %v833_v43  ;;  %854 = vst [vmem:[%s1664_s4 + $0x8] sm:$0xff] (!%p943_p6), %v834_v44 }
 0x356   : > { %852 = sbr.rel (%p943_p6) target bundleno = 861 (0x35d), region = 48  ;;  %944 = vst [vmem:[%s1664_s4 + $0x10] sm:$0xff] (!%p943_p6), %v839_v45  ;;  %945 = vst [vmem:[%s1664_s4 + $0x18] sm:$0xff] (!%p943_p6), %v840_v46 }
 0x35d PF: > { %s14_s15 = sadd.s32 1, %s1488_s15  }
 0x35e   : > { %p11_p7 = scmp.ge.s32.totalorder %s14_s15, 4  }
 0x360   :  { %13 = sbr.rel (!%p11_p7) target bundleno = 1 (0x1), region = 84 }

</bundles_post_ra>
